<compile_context>
chip_gen: v7x
topology: tpu7x:2x2x1
jax: 0.10.0
libtpu: 0.0.40
codegen_flags: <defaults>
</compile_context>

<pallas_src>
import functools

import jax
import jax.numpy as jnp
from jax.experimental import pallas as pl
from jax.experimental.pallas import tpu as pltpu


@functools.lru_cache(maxsize=None)
def _vmem_limit_bytes():
    """~3/4 of physical VMEM: ~48 MiB on v7x (64 MiB), ~96 MiB on v5e/v6e."""
    try:
        cap = getattr(pltpu.get_tpu_info(), "vmem_capacity_bytes", None)
        if cap:
            return int(cap) * 3 // 4
    except Exception:
        pass
    return 48 * 1024 * 1024


def _pick_tile(n, target):
    """Largest multiple-of-8 divisor of n that is <= target (else full n)."""
    t = min(n, target)
    t -= t % 8
    while t >= 8:
        if n % t == 0:
            return t
        t -= 8
    # TODO(synk): support ragged N (not a multiple of 8) with masked tails.
    return n


# ---------------------------------------------------------------------------
# Kernel 1: fused q/k/v projection, head-major output (B, H, N, hd)
# ---------------------------------------------------------------------------
def _qkv_proj_kernel(x_ref, wq_ref, wk_ref, wv_ref, bq_ref, bk_ref, bv_ref,
                     q_ref, k_ref, v_ref, *, matmul_dtype):
    x = x_ref[0].astype(matmul_dtype)                       # (tn, C)

    def proj(w_ref, b_ref, o_dtype):
        acc = jnp.dot(x, w_ref[0].astype(matmul_dtype),
                      preferred_element_type=jnp.float32)   # (tn, hd) fp32
        return (acc + b_ref[0]).astype(o_dtype)             # bias is fp32

    q_ref[0, 0] = proj(wq_ref, bq_ref, q_ref.dtype)   # scale pre-folded into wq/bq
    k_ref[0, 0] = proj(wk_ref, bk_ref, k_ref.dtype)
    v_ref[0, 0] = proj(wv_ref, bv_ref, v_ref.dtype)


def qkv_projection(x, p, *, num_heads, matmul_dtype, tn_target=512):
    B, N, C = x.shape
    hd = C // num_heads
    tn = _pick_tile(N, tn_target)
    grid = (B, N // tn, num_heads)   # head innermost: x tile reused across heads
    kernel = functools.partial(_qkv_proj_kernel, matmul_dtype=matmul_dtype)
    qkv_shape = jax.ShapeDtypeStruct((B, num_heads, N, hd), matmul_dtype)
    w_spec = pl.BlockSpec((1, C, hd), lambda b, i, h: (h, 0, 0))
    b_spec = pl.BlockSpec((1, 1, hd), lambda b, i, h: (h, 0, 0))
    o_spec = pl.BlockSpec((1, 1, tn, hd), lambda b, i, h: (b, h, i, 0))
    return pl.pallas_call(
        kernel,
        out_shape=(qkv_shape, qkv_shape, qkv_shape),
        grid=grid,
        in_specs=[
            pl.BlockSpec((1, tn, C), lambda b, i, h: (b, i, 0)),
            w_spec, w_spec, w_spec,
            b_spec, b_spec, b_spec,
        ],
        out_specs=(o_spec, o_spec, o_spec),
        compiler_params=pltpu.CompilerParams(
            dimension_semantics=("parallel", "parallel", "parallel"),
            vmem_limit_bytes=_vmem_limit_bytes(),
        ),
    )(x, p["wq"], p["wk"], p["wv"], p["bq"], p["bk"], p["bv"])


# ---------------------------------------------------------------------------
# Kernel 2: flash attention (online softmax) with fused output projection
# ---------------------------------------------------------------------------
def _flash_proj_kernel(q_ref, k_ref, v_ref, pw_ref, pb_ref, o_ref,
                       m_scr, l_scr, acc_scr, pacc_scr, *, matmul_dtype):
    h = pl.program_id(2)
    ki = pl.program_id(3)
    n_heads = pl.num_programs(2)
    n_kv = pl.num_programs(3)

    @pl.when(jnp.logical_and(h == 0, ki == 0))
    def _():
        pacc_scr[...] = jnp.zeros_like(pacc_scr)

    @pl.when(ki == 0)
    def _():
        m_scr[...] = jnp.full_like(m_scr, -jnp.inf)
        l_scr[...] = jnp.zeros_like(l_scr)
        acc_scr[...] = jnp.zeros_like(acc_scr)

    q = q_ref[0, 0]                       # (tq, hd); scale folded into weights
    k = k_ref[0, 0]                       # (tkv, hd)
    v = v_ref[0, 0]                       # (tkv, hd)

    # QK^T contracting the last axes directly (no k.T relayout), fp32 scores.
    s = jax.lax.dot_general(q, k, (((1,), (1,)), ((), ())),
                            preferred_element_type=jnp.float32)   # (tq, tkv)

    m_prev = m_scr[...]
    m_new = jnp.maximum(m_prev, jnp.max(s, axis=-1, keepdims=True))
    alpha = jnp.exp(m_prev - m_new)                                # fp32 EUP
    p = jnp.exp(s - m_new)                                         # fp32 EUP
    l_scr[...] = alpha * l_scr[...] + jnp.sum(p, axis=-1, keepdims=True)
    acc_scr[...] = alpha * acc_scr[...] + jnp.dot(
        p.astype(matmul_dtype), v, preferred_element_type=jnp.float32)
    m_scr[...] = m_new

    # Per-head finalize: fold this head into the fused projection accumulator.
    @pl.when(ki == n_kv - 1)
    def _():
        out_h = acc_scr[...] * pl.reciprocal(l_scr[...], approx=True)  # (tq, hd)
        pacc_scr[...] += jnp.dot(out_h.astype(matmul_dtype),
                                 pw_ref[0].astype(matmul_dtype),
                                 preferred_element_type=jnp.float32)

    # Single lane-dense (tq, C) store once all heads are accumulated.
    @pl.when(jnp.logical_and(h == n_heads - 1, ki == n_kv - 1))
    def _():
        o_ref[0] = (pacc_scr[...] + pb_ref[...]).astype(o_ref.dtype)


def flash_attention_proj(q, k, v, pw, pb, *, out_dtype, matmul_dtype,
                         tq_target=256, tkv_target=256):
    B, num_heads, N, hd = q.shape
    C = num_heads * hd
    tq = _pick_tile(N, tq_target)
    tkv = _pick_tile(N, tkv_target)
    grid = (B, N // tq, num_heads, N // tkv)
    kernel = functools.partial(_flash_proj_kernel, matmul_dtype=matmul_dtype)
    return pl.pallas_call(
        kernel,
        out_shape=jax.ShapeDtypeStruct((B, N, C), out_dtype),
        grid=grid,
        in_specs=[
            pl.BlockSpec((1, 1, tq, hd), lambda b, qi, h, ki: (b, h, qi, 0)),
            pl.BlockSpec((1, 1, tkv, hd), lambda b, qi, h, ki: (b, h, ki, 0)),
            pl.BlockSpec((1, 1, tkv, hd), lambda b, qi, h, ki: (b, h, ki, 0)),
            pl.BlockSpec((1, hd, C), lambda b, qi, h, ki: (h, 0, 0)),
            pl.BlockSpec((1, C), lambda b, qi, h, ki: (0, 0)),
        ],
        out_specs=pl.BlockSpec((1, tq, C), lambda b, qi, h, ki: (b, qi, 0)),
        scratch_shapes=[
            pltpu.VMEM((tq, 1), jnp.float32),    # running max
            pltpu.VMEM((tq, 1), jnp.float32),    # running denom
            pltpu.VMEM((tq, hd), jnp.float32),   # per-head attention acc
            pltpu.VMEM((tq, C), jnp.float32),    # fused projection acc
        ],
        compiler_params=pltpu.CompilerParams(
            dimension_semantics=("parallel", "parallel", "arbitrary", "arbitrary"),
            vmem_limit_bytes=_vmem_limit_bytes(),
        ),
    )(q, k, v, pw, pb)


# ---------------------------------------------------------------------------
# Parameters (canonical, mirroring the PyTorch module) + kernel-layout repack
# ---------------------------------------------------------------------------
def init_attention_params(key, dim):
    """trunc_normal(std=0.02) ~ normal*0.02, zero bias.  (in, out) layout."""
    kq, kkv, kp = jax.random.split(key, 3)
    std = 0.02
    return {
        "q_w": jax.random.normal(kq, (dim, dim), jnp.float32) * std,
        "q_b": jnp.zeros((dim,), jnp.float32),
        "kv_w": jax.random.normal(kkv, (dim, 2 * dim), jnp.float32) * std,
        "kv_b": jnp.zeros((2 * dim,), jnp.float32),
        "proj_w": jax.random.normal(kp, (dim, dim), jnp.float32) * std,
        "proj_b": jnp.zeros((dim,), jnp.float32),
    }


def prepare_params(params, num_heads, *, use_bf16_matmul=False):
    """One-time repack: head-major weights, softmax scale folded into q."""
    C = params["q_w"].shape[0]
    hd = C // num_heads
    scale = hd ** (-0.5)
    wdt = jnp.bfloat16 if use_bf16_matmul else params["q_w"].dtype

    def per_head(w):                      # (C, C) -> (num_heads, C, hd)
        return jnp.transpose(w.reshape(C, num_heads, hd), (1, 0, 2))

    k_w, v_w = jnp.split(params["kv_w"], 2, axis=-1)
    k_b, v_b = jnp.split(params["kv_b"], 2, axis=-1)
    return {
        "wq": per_head(params["q_w"] * scale).astype(wdt),
        "wk": per_head(k_w).astype(wdt),
        "wv": per_head(v_w).astype(wdt),
        # biases stay fp32 (added onto fp32 accumulators)
        "bq": (params["q_b"] * scale).reshape(num_heads, 1, hd).astype(jnp.float32),
        "bk": k_b.reshape(num_heads, 1, hd).astype(jnp.float32),
        "bv": v_b.reshape(num_heads, 1, hd).astype(jnp.float32),
        "pw": params["proj_w"].reshape(num_heads, hd, C).astype(wdt),
        "pb": params["proj_b"].reshape(1, C).astype(jnp.float32),
    }


def attention_forward(prepped, x, H, W, num_heads):
    B, N, C = x.shape
    assert N == H * W
    matmul_dtype = prepped["wq"].dtype

    # Head-major q/k/v (B, H, N, hd); stored in matmul dtype (bf16 halves HBM).
    q, k, v = qkv_projection(x, prepped, num_heads=num_heads,
                             matmul_dtype=matmul_dtype)

    # Flash attention + fused output projection -> (B, N, C) in x.dtype.
    return flash_attention_proj(q, k, v, prepped["pw"], prepped["pb"],
                                out_dtype=x.dtype, matmul_dtype=matmul_dtype)


# ---------------------------------------------------------------------------
# Pure-JAX reference (mirrors the PyTorch forward exactly)
# ---------------------------------------------------------------------------
def attention_ref(params, x, num_heads):
    B, N, C = x.shape
    hd = C // num_heads
    scale = hd ** (-0.5)
    q = x @ params["q_w"] + params["q_b"]
    kv = x @ params["kv_w"] + params["kv_b"]
    k, v = jnp.split(kv, 2, axis=-1)
    q = q.reshape(B, N, num_heads, hd).transpose(0, 2, 1, 3)
    k = k.reshape(B, N, num_heads, hd).transpose(0, 2, 1, 3)
    v = v.reshape(B, N, num_heads, hd).transpose(0, 2, 1, 3)
    attn = jnp.einsum("bhqd,bhkd->bhqk", q, k) * scale
    attn = jax.nn.softmax(attn, axis=-1)
    o = jnp.einsum("bhqk,bhkd->bhqd", attn, v)
    o = o.transpose(0, 2, 1, 3).reshape(B, N, C)
    return o @ params["proj_w"] + params["proj_b"]


# ---------------------------------------------------------------------------
if __name__ == "__main__":
    key = jax.random.PRNGKey(0)
    kparam, kx = jax.random.split(key)

    B, H, W = 2, 8, 8
    N = H * W
    dim = 32
    num_heads = 4

    params = init_attention_params(kparam, dim)
    x = jax.random.normal(kx, (B, N, dim), jnp.float32)
    ref = attention_ref(params, x, num_heads)

    # fp32-operand path.
    prepped = prepare_params(params, num_heads)
    out = jax.block_until_ready(attention_forward(prepped, x, H, W, num_heads))
    assert out.shape == (B, N, dim), out.shape
    assert jnp.all(jnp.isfinite(out))
    assert jnp.allclose(out, ref, rtol=2e-2, atol=1e-3), (
        "fp32 max abs err", float(jnp.max(jnp.abs(out - ref))))

    # bf16-MXU-operand / fp32-softmax path (v5e/v6e/v7x throughput mode).
    prepped_bf16 = prepare_params(params, num_heads, use_bf16_matmul=True)
    out_bf16 = jax.block_until_ready(
        attention_forward(prepped_bf16, x, H, W, num_heads))
    assert out_bf16.shape == (B, N, dim)
    assert jnp.all(jnp.isfinite(out_bf16))
    assert jnp.allclose(out_bf16, ref, rtol=5e-2, atol=2e-3), (
        "bf16 max abs err", float(jnp.max(jnp.abs(out_bf16 - ref))))

    print("KERNEL_OK")
</pallas_src>

<mosaic_0001>
module attributes {stable_mosaic.version = 11 : i64} {
  func.func @_qkv_proj_kernel(%arg0: i32, %arg1: i32, %arg2: i32, %arg3: memref<1x64x32xf32, #tpu.memory_space<vmem>>, %arg4: memref<1x32x8xf32, #tpu.memory_space<vmem>>, %arg5: memref<1x32x8xf32, #tpu.memory_space<vmem>>, %arg6: memref<1x32x8xf32, #tpu.memory_space<vmem>>, %arg7: memref<1x1x8xf32, #tpu.memory_space<vmem>>, %arg8: memref<1x1x8xf32, #tpu.memory_space<vmem>>, %arg9: memref<1x1x8xf32, #tpu.memory_space<vmem>>, %arg10: memref<1x1x64x8xf32, #tpu.memory_space<vmem>>, %arg11: memref<1x1x64x8xf32, #tpu.memory_space<vmem>>, %arg12: memref<1x1x64x8xf32, #tpu.memory_space<vmem>>) attributes {dimension_semantics = [#tpu.dimension_semantics<parallel>, #tpu.dimension_semantics<parallel>, #tpu.dimension_semantics<parallel>], iteration_bounds = array<i64: 2, 1, 4>, scalar_prefetch = 0 : i64, scratch_operands = 0 : i64, tpu.core_type = #tpu.core_type<tc>, window_params = [{transform_indices = @transform_0, window_bounds = array<i64: 1, 64, 32>}, {transform_indices = @transform_1, window_bounds = array<i64: 1, 32, 8>}, {transform_indices = @transform_2, window_bounds = array<i64: 1, 32, 8>}, {transform_indices = @transform_3, window_bounds = array<i64: 1, 32, 8>}, {transform_indices = @transform_4, window_bounds = array<i64: 1, 1, 8>}, {transform_indices = @transform_5, window_bounds = array<i64: 1, 1, 8>}, {transform_indices = @transform_6, window_bounds = array<i64: 1, 1, 8>}, {transform_indices = @transform_7, window_bounds = array<i64: 1, 1, 64, 8>}, {transform_indices = @transform_8, window_bounds = array<i64: 1, 1, 64, 8>}, {transform_indices = @transform_9, window_bounds = array<i64: 1, 1, 64, 8>}]} {
    %c0 = arith.constant 0 : index
    %c0_0 = arith.constant 0 : index
    %c0_1 = arith.constant 0 : index
    %0 = vector.load %arg3[%c0, %c0_0, %c0_1] : memref<1x64x32xf32, #tpu.memory_space<vmem>>, vector<1x64x32xf32>
    %1 = vector.shape_cast %0 : vector<1x64x32xf32> to vector<64x32xf32>
    %c0_2 = arith.constant 0 : index
    %c0_3 = arith.constant 0 : index
    %c0_4 = arith.constant 0 : index
    %2 = vector.load %arg4[%c0_2, %c0_3, %c0_4] : memref<1x32x8xf32, #tpu.memory_space<vmem>>, vector<1x32x8xf32>
    %3 = vector.shape_cast %2 : vector<1x32x8xf32> to vector<32x8xf32>
    %cst = arith.constant dense<0.000000e+00> : vector<64x8xf32>
    %4 = tpu.matmul %1, %3, %cst {dimension_numbers = #tpu.dot_dimension_numbers<[1], [0], [0], [1], [0, 0, 1, 1], [], []>} : vector<64x32xf32>, vector<32x8xf32>, vector<64x8xf32> -> vector<64x8xf32>
    %c0_5 = arith.constant 0 : index
    %c0_6 = arith.constant 0 : index
    %c0_7 = arith.constant 0 : index
    %5 = vector.load %arg7[%c0_5, %c0_6, %c0_7] : memref<1x1x8xf32, #tpu.memory_space<vmem>>, vector<1x1x8xf32>
    %6 = vector.shape_cast %5 : vector<1x1x8xf32> to vector<1x8xf32>
    %7 = vector.broadcast %6 : vector<1x8xf32> to vector<64x8xf32>
    %8 = arith.addf %4, %7 : vector<64x8xf32>
    %c0_8 = arith.constant 0 : index
    %c0_9 = arith.constant 0 : index
    %c0_10 = arith.constant 0 : index
    %c0_11 = arith.constant 0 : index
    %9 = vector.load %arg10[%c0_8, %c0_9, %c0_10, %c0_11] : memref<1x1x64x8xf32, #tpu.memory_space<vmem>>, vector<1x1x64x8xf32>
    %10 = vector.shape_cast %9 : vector<1x1x64x8xf32> to vector<64x8xf32>
    %11 = vector.shape_cast %8 : vector<64x8xf32> to vector<1x1x64x8xf32>
    tpu.vector_store %arg10[%c0_8, %c0_9, %c0_10, %c0_11], %11 {strides = array<i32>} : memref<1x1x64x8xf32, #tpu.memory_space<vmem>>, vector<1x1x64x8xf32>,
    %c0_12 = arith.constant 0 : index
    %c0_13 = arith.constant 0 : index
    %c0_14 = arith.constant 0 : index
    %12 = vector.load %arg5[%c0_12, %c0_13, %c0_14] : memref<1x32x8xf32, #tpu.memory_space<vmem>>, vector<1x32x8xf32>
    %13 = vector.shape_cast %12 : vector<1x32x8xf32> to vector<32x8xf32>
    %cst_15 = arith.constant dense<0.000000e+00> : vector<64x8xf32>
    %14 = tpu.matmul %1, %13, %cst_15 {dimension_numbers = #tpu.dot_dimension_numbers<[1], [0], [0], [1], [0, 0, 1, 1], [], []>} : vector<64x32xf32>, vector<32x8xf32>, vector<64x8xf32> -> vector<64x8xf32>
    %c0_16 = arith.constant 0 : index
    %c0_17 = arith.constant 0 : index
    %c0_18 = arith.constant 0 : index
    %15 = vector.load %arg8[%c0_16, %c0_17, %c0_18] : memref<1x1x8xf32, #tpu.memory_space<vmem>>, vector<1x1x8xf32>
    %16 = vector.shape_cast %15 : vector<1x1x8xf32> to vector<1x8xf32>
    %17 = vector.broadcast %16 : vector<1x8xf32> to vector<64x8xf32>
    %18 = arith.addf %14, %17 : vector<64x8xf32>
    %c0_19 = arith.constant 0 : index
    %c0_20 = arith.constant 0 : index
    %c0_21 = arith.constant 0 : index
    %c0_22 = arith.constant 0 : index
    %19 = vector.load %arg11[%c0_19, %c0_20, %c0_21, %c0_22] : memref<1x1x64x8xf32, #tpu.memory_space<vmem>>, vector<1x1x64x8xf32>
    %20 = vector.shape_cast %19 : vector<1x1x64x8xf32> to vector<64x8xf32>
    %21 = vector.shape_cast %18 : vector<64x8xf32> to vector<1x1x64x8xf32>
    tpu.vector_store %arg11[%c0_19, %c0_20, %c0_21, %c0_22], %21 {strides = array<i32>} : memref<1x1x64x8xf32, #tpu.memory_space<vmem>>, vector<1x1x64x8xf32>,
    %c0_23 = arith.constant 0 : index
    %c0_24 = arith.constant 0 : index
    %c0_25 = arith.constant 0 : index
    %22 = vector.load %arg6[%c0_23, %c0_24, %c0_25] : memref<1x32x8xf32, #tpu.memory_space<vmem>>, vector<1x32x8xf32>
    %23 = vector.shape_cast %22 : vector<1x32x8xf32> to vector<32x8xf32>
    %cst_26 = arith.constant dense<0.000000e+00> : vector<64x8xf32>
    %24 = tpu.matmul %1, %23, %cst_26 {dimension_numbers = #tpu.dot_dimension_numbers<[1], [0], [0], [1], [0, 0, 1, 1], [], []>} : vector<64x32xf32>, vector<32x8xf32>, vector<64x8xf32> -> vector<64x8xf32>
    %c0_27 = arith.constant 0 : index
    %c0_28 = arith.constant 0 : index
    %c0_29 = arith.constant 0 : index
    %25 = vector.load %arg9[%c0_27, %c0_28, %c0_29] : memref<1x1x8xf32, #tpu.memory_space<vmem>>, vector<1x1x8xf32>
    %26 = vector.shape_cast %25 : vector<1x1x8xf32> to vector<1x8xf32>
    %27 = vector.broadcast %26 : vector<1x8xf32> to vector<64x8xf32>
    %28 = arith.addf %24, %27 : vector<64x8xf32>
    %c0_30 = arith.constant 0 : index
    %c0_31 = arith.constant 0 : index
    %c0_32 = arith.constant 0 : index
    %c0_33 = arith.constant 0 : index
    %29 = vector.load %arg12[%c0_30, %c0_31, %c0_32, %c0_33] : memref<1x1x64x8xf32, #tpu.memory_space<vmem>>, vector<1x1x64x8xf32>
    %30 = vector.shape_cast %29 : vector<1x1x64x8xf32> to vector<64x8xf32>
    %31 = vector.shape_cast %28 : vector<64x8xf32> to vector<1x1x64x8xf32>
    tpu.vector_store %arg12[%c0_30, %c0_31, %c0_32, %c0_33], %31 {strides = array<i32>} : memref<1x1x64x8xf32, #tpu.memory_space<vmem>>, vector<1x1x64x8xf32>,
    return
  }
  func.func @transform_0(%arg0: i32, %arg1: i32, %arg2: i32) -> (i32, i32, i32) {
    %c0_i32 = arith.constant 0 : i32
    %c0_i32_0 = arith.constant 0 : i32
    return %arg0, %arg1, %c0_i32 : i32, i32, i32
  }
  func.func @transform_1(%arg0: i32, %arg1: i32, %arg2: i32) -> (i32, i32, i32) {
    %c0_i32 = arith.constant 0 : i32
    %c0_i32_0 = arith.constant 0 : i32
    %c0_i32_1 = arith.constant 0 : i32
    return %arg2, %c0_i32, %c0_i32_0 : i32, i32, i32
  }
  func.func @transform_2(%arg0: i32, %arg1: i32, %arg2: i32) -> (i32, i32, i32) {
    %c0_i32 = arith.constant 0 : i32
    %c0_i32_0 = arith.constant 0 : i32
    %c0_i32_1 = arith.constant 0 : i32
    return %arg2, %c0_i32, %c0_i32_0 : i32, i32, i32
  }
  func.func @transform_3(%arg0: i32, %arg1: i32, %arg2: i32) -> (i32, i32, i32) {
    %c0_i32 = arith.constant 0 : i32
    %c0_i32_0 = arith.constant 0 : i32
    %c0_i32_1 = arith.constant 0 : i32
    return %arg2, %c0_i32, %c0_i32_0 : i32, i32, i32
  }
  func.func @transform_4(%arg0: i32, %arg1: i32, %arg2: i32) -> (i32, i32, i32) {
    %c0_i32 = arith.constant 0 : i32
    %c0_i32_0 = arith.constant 0 : i32
    %c0_i32_1 = arith.constant 0 : i32
    return %arg2, %c0_i32, %c0_i32_0 : i32, i32, i32
  }
  func.func @transform_5(%arg0: i32, %arg1: i32, %arg2: i32) -> (i32, i32, i32) {
    %c0_i32 = arith.constant 0 : i32
    %c0_i32_0 = arith.constant 0 : i32
    %c0_i32_1 = arith.constant 0 : i32
    return %arg2, %c0_i32, %c0_i32_0 : i32, i32, i32
  }
  func.func @transform_6(%arg0: i32, %arg1: i32, %arg2: i32) -> (i32, i32, i32) {
    %c0_i32 = arith.constant 0 : i32
    %c0_i32_0 = arith.constant 0 : i32
    %c0_i32_1 = arith.constant 0 : i32
    return %arg2, %c0_i32, %c0_i32_0 : i32, i32, i32
  }
  func.func @transform_7(%arg0: i32, %arg1: i32, %arg2: i32) -> (i32, i32, i32, i32) {
    %c0_i32 = arith.constant 0 : i32
    %c0_i32_0 = arith.constant 0 : i32
    return %arg0, %arg2, %arg1, %c0_i32 : i32, i32, i32, i32
  }
  func.func @transform_8(%arg0: i32, %arg1: i32, %arg2: i32) -> (i32, i32, i32, i32) {
    %c0_i32 = arith.constant 0 : i32
    %c0_i32_0 = arith.constant 0 : i32
    return %arg0, %arg2, %arg1, %c0_i32 : i32, i32, i32, i32
  }
  func.func @transform_9(%arg0: i32, %arg1: i32, %arg2: i32) -> (i32, i32, i32, i32) {
    %c0_i32 = arith.constant 0 : i32
    %c0_i32_0 = arith.constant 0 : i32
    return %arg0, %arg2, %arg1, %c0_i32 : i32, i32, i32, i32
  }
}

</mosaic_0001>

<bundles_post_ra>
// kernel: tpu_custom_call.1
= control target key start
LH: loop header
LB: loop body
LE: loop exit
PB: predicated region body
PF: predicated region fallthrough
CT: control target
= control target key end

     0   :  { %s1577_s30 = smov 0   ;;  %s1579_s10 = smov 0   ;;  %s1746_s0 = inlined_call_operand.vmem [shape: f32[2,64,32], index: 0, kind: input, shape index: {}]   ;;  %s1747_s1 = inlined_call_operand.vmem [shape: f32[4,32,8], index: 1, kind: input, shape index: {}]   ;;  %s1748_s2 = inlined_call_operand.vmem [shape: f32[4,32,8], index: 2, kind: input, shape index: {}]   ;;  %s1749_s3 = inlined_call_operand.vmem [shape: f32[4,32,8], index: 3, kind: input, shape index: {}]   ;;  %s1750_s4 = inlined_call_operand.vmem [shape: f32[4,1,8], index: 4, kind: input, shape index: {}]   ;;  %s1751_s5 = inlined_call_operand.vmem [shape: f32[4,1,8], index: 5, kind: input, shape index: {}]   ;;  %s1752_s6 = inlined_call_operand.vmem [shape: f32[4,1,8], index: 6, kind: input, shape index: {}]   ;;  %s1753_s7 = inlined_call_operand.vmem [shape: f32[2,4,64,8], index: 7, kind: output, shape index: {0}]   ;;  %s1754_s8 = inlined_call_operand.vmem [shape: f32[2,4,64,8], index: 8, kind: output, shape index: {1}]   ;;  %s1755_s9 = inlined_call_operand.vmem [shape: f32[2,4,64,8], index: 9, kind: output, shape index: {2}]  }
   0x1   :  { %s1581_s11 = smov 0   ;;  %s1583_s12 = smov 0  }
   0x2   :  { %s1585_s13 = smov 0  }
   0x3 LB: > { %s32_s14 = sadd.s32 1, %s1517_s11  ;;  %s39_s15 = sadd.s32 1, %s1521_s12  ;;  %s1525_s13 = sphi %s1585_s13, %s20_s13   ;;  %s1521_s12 = sphi %s1583_s12, %s1759_s12   ;;  %s1517_s11 = sphi %s1581_s11, %s1758_s11   ;;  %s1513_s10 = sphi %s1579_s10, %s1757_s10   ;;  %s1509_s30 = sphi %s1577_s30, %s1756_s30  }
   0x4   : > { %p33_p0 = scmp.ge.s32.totalorder %s32_s14, 4  ;;  %p1272_p1 = scmp.ge.s32.totalorder %s1525_s13, 1 }
   0x5   : > { %p384_p2 = scmp.lt.s32.totalorder %s1525_s13, 9 }
   0x6   : > { %s1761_s14 = smov (%p33_p0, %s32_s14), 0  ;;  %s1763_s15 = smov (!%p33_p0, %s39_s15), %s1521_s12 }
   0x7   : > { %p385_p3 = pnand %p1272_p1, %p384_p2  ;;  %p41_p4 = scmp.ge.s32.totalorder %s1763_s15, 2 }
   0x8   : > { %p492_p5 = scmp.lt.s32.totalorder (!%p385_p3), %s1509_s30, 3  ;;  %p483_p6 = scmp.lt.s32.totalorder (!%p385_p3), %s1513_s10, 1  ;;  %vm577_vm0 = vcmask (!%p385_p3), 261120   ;;  %vm707_vm1 = vcmask (!%p385_p3), 64512  }
   0x9   : > { %s1765_s15 = smov (%p41_p4, %s1763_s15), 0  ;;  %388 = sbr.rel (%p385_p3) target bundleno = 267 (0x10b), region = 48 }
  0x10   : > { %s1767_s30 = smov (!%p492_p5, %s1509_s30), 3  ;;  %s1769_s10 = smov (!%p483_p6, %s1513_s10), 1 }
  0x11   : > { %s1320_s16 = sshll.u32 %s1767_s30, 5  ;;  %s1319_s20 = sshll.u32 %s1769_s10, 6 }
  0x12   : > { %s496_s19 = scalar_lea.vmem %s1747_s1, %s1320_s16  ;;  %s1619_s23 = scalar_lea.vmem %s1746_s0, %s1319_s20 }
  0x13   : > { %v566_v0 = vld [vmem:[%s496_s19] sm:$0xff]  ;;  %v567_v1 = vld [vmem:[%s496_s19 + $0x8] sm:$0xff]  ;;  %v568_v2 = vld [vmem:[%s496_s19 + $0x10] sm:$0xff]  ;;  %s501_s26 = scalar_lea.vmem %s1748_s2, %s1320_s16  ;;  %s506_s29 = scalar_lea.vmem %s1749_s3, %s1320_s16 }
  0x14   : > { %v1419_v3 = vpack.c.bf16 %v567_v1, %v566_v0  ;;  %v569_v4 = vld [vmem:[%s496_s19 + $0x18] sm:$0xff]  ;;  %v558_v5 = vld [vmem:[%s1619_s23] sm:$0xff]  ;;  %v717_v9 = vld [vmem:[%s501_s26 + $0x8] sm:$0xff]  ;;  %s1281_s16 = sshll.u32 %s1767_s30, 3  ;;  %s1282_s17 = sshll.u32 %s1769_s10, 5 }
  0x15   : > { %v562_v6 = vld [vmem:[%s1619_s23 + $0x20] sm:$0xff]  ;;  %v1423_v7 = vpack.c.bf16 %v569_v4, %v568_v2  ;;  %1367 = vmatprep.mubr.msk.f32.mxu0 %vm577_vm0, %v558_v5  ;;  %v841_v11 = vld [vmem:[%s506_s29 + $0x8] sm:$0xff]  ;;  %v718_v14 = vld [vmem:[%s501_s26 + $0x10] sm:$0xff]  ;;  %s526_s18 = sadd.s32 %s1282_s17, %s1281_s16  ;;  %s509_s21 = scalar_lea.vmem %s1750_s4, %s1767_s30 }
  0x16   : > { %1373 = vmatprep.mubr.msk.f32.mxu1 %vm577_vm0, %v562_v6  ;;  %v716_v8 = vld [vmem:[%s501_s26] sm:$0xff]  ;;  %1420 = vmatprep.subr.bf16.mxu0 %v1419_v3  ;;  %v719_v15 = vld [vmem:[%s501_s26 + $0x18] sm:$0xff]  ;;  %v842_v16 = vld [vmem:[%s506_s29 + $0x10] sm:$0xff]  ;;  %s1665_s22 = sshll.u32 %s526_s18, 3  ;;  %s512_s27 = scalar_lea.vmem %s1751_s5, %s1767_s30 }
  0x17   : > { %1443 = vmatprep.subr.bf16.mxu1 %v1419_v3  ;;  %v840_v10 = vld [vmem:[%s506_s29] sm:$0xff]  ;;  %1422 = vmatpush3.bf16.msra.mxu0 %v1419_v3  ;;  %v1427_v12 = vpack.c.bf16 %v717_v9, %v716_v8  ;;  %v843_v17 = vld [vmem:[%s506_s29 + $0x18] sm:$0xff]  ;;  %v559_v18 = vld [vmem:[%s1619_s23 + $0x8] sm:$0xff]  ;;  %v1431_v22 = vpack.c.bf16 %v719_v15, %v718_v14  ;;  %s528_s25 = scalar_lea.vmem %s1753_s7, %s1665_s22  ;;  %s515_s16 = scalar_lea.vmem %s1752_s6, %s1767_s30 }
  0x18   : > { %1445 = vmatpush3.bf16.msra.mxu1 %v1419_v3  ;;  %1424 = vmatprep.subr.bf16.mxu0 %v1423_v7  ;;  %v1435_v13 = vpack.c.bf16 %v841_v11, %v840_v10  ;;  %v563_v19 = vld [vmem:[%s1619_s23 + $0x28] sm:$0xff]  ;;  %v560_v20 = vld [vmem:[%s1619_s23 + $0x10] sm:$0xff]  ;;  %v1439_v23 = vpack.c.bf16 %v843_v17, %v842_v16  ;;  %v561_v24 = vld [vmem:[%s1619_s23 + $0x18] sm:$0xff]  ;;  %s1691_s18 = scalar_lea.vmem %s1754_s8, %s1665_s22 }
  0x19   : > { %1444 = vmatprep.subr.bf16.mxu1 %v1423_v7  ;;  %v564_v21 = vld [vmem:[%s1619_s23 + $0x30] sm:$0xff]  ;;  %v565_v25 = vld [vmem:[%s1619_s23 + $0x38] sm:$0xff]  ;;  %v1290_v26 = vld [vmem:[%s509_s21] ss:$0 sm:$0xff]  ;;  %s1697_s21 = scalar_lea.vmem %s1755_s9, %s1665_s22 }
  0x1a   : > { %v1299_v43 = vld [vmem:[%s512_s27] ss:$0 sm:$0xff] }
  0x1b   : > { %1426 = vmatpush3.bf16.msra.mxu0 %v1423_v7  ;;  %v1308_v44 = vld [vmem:[%s515_s16] ss:$0 sm:$0xff] }
  0x1c   : > { %1446 = vmatpush3.bf16.msra.mxu1 %v1423_v7  ;;  %1436 = vmatprep.subr.bf16.mxu0 %v1435_v13 }
  0x1d   : > { %1428 = vmatprep.subr.bf16.mxu1 %v1427_v12 }
  0x1e   : > { %1368 = vmatmul.mubr.msk.f32.vlgmr.msra.gmra.mrb[0].mxu0 %vm577_vm0, %v559_v18 }
  0x1f   : > { %1374 = vmatmul.mubr.msk.f32.vlgmr.msra.gmra.mrb[0].mxu1 %vm577_vm0, %v563_v19  ;;  %1438 = vmatpush3.bf16.msra.mxu0 %v1435_v13 }
  0x20   : > { %1430 = vmatpush3.bf16.msra.mxu1 %v1427_v12  ;;  %1370 = vmatprep.mubr.msk.f32.mxu0 %vm577_vm0, %v560_v20 }
  0x21   : > { %1376 = vmatprep.mubr.msk.f32.mxu1 %vm577_vm0, %v564_v21  ;;  %1432 = vmatprep.subr.bf16.mxu1 %v1431_v22 }
  0x22   : > { %1440 = vmatprep.subr.bf16.mxu0 %v1439_v23  ;;  %1371 = vmatmul.mubr.msk.f32.gmra.mrb[2].mxu0 %vm577_vm0, %v561_v24 }
  0x23   : > { %1377 = vmatmul.mubr.msk.f32.gmra.mrb[2].mxu1 %vm577_vm0, %v565_v25  ;;  %1442 = vmatpush3.bf16.msra.mxu0 %v1439_v23 }
  0x24   : > { %1434 = vmatpush3.bf16.msra.mxu1 %v1431_v22  ;;  %1387 = vmatprep.mubr.msk.f32.mxu1 %vm577_vm0, %v558_v5 }
  0x25   : > { %1407 = vmatprep.mubr.msk.f32.mxu0 %vm577_vm0, %v558_v5 }
  0x26   : > { %1408 = vmatmul.mubr.msk.f32.vlgmr.msra.gmra.mrb[4].mxu0 %vm577_vm0, %v559_v18 }
  0x27   : > { %1388 = vmatmul.mubr.msk.f32.vlgmr.msra.gmra.mrb[4].mxu1 %vm577_vm0, %v559_v18  ;;  %1410 = vmatprep.mubr.msk.f32.mxu0 %vm577_vm0, %v560_v20 }
  0x28   : > { %1390 = vmatprep.mubr.msk.f32.mxu1 %vm577_vm0, %v560_v20 }
  0x2a   : > { %1411 = vmatmul.mubr.msk.f32.gmra.mrb[6].mxu0 %vm577_vm0, %v561_v24 }
  0x2b   : > { %1391 = vmatmul.mubr.msk.f32.gmra.mrb[6].mxu1 %vm577_vm0, %v561_v24  ;;  %1413 = vmatprep.mubr.msk.f32.mxu0 %vm577_vm0, %v562_v6 }
  0x2c   : > { %1393 = vmatprep.mubr.msk.f32.mxu1 %vm577_vm0, %v562_v6 }
  0x2e   : > { %1414 = vmatmul.mubr.msk.f32.gmra.mrb[8].mxu0 %vm577_vm0, %v563_v19 }
  0x2f   : > { %1394 = vmatmul.mubr.msk.f32.gmra.mrb[8].mxu1 %vm577_vm0, %v563_v19  ;;  %1416 = vmatprep.mubr.msk.f32.mxu0 %vm577_vm0, %v564_v21 }
  0x30   : > { %1396 = vmatprep.mubr.msk.f32.mxu1 %vm577_vm0, %v564_v21 }
  0x32   : > { %1417 = vmatmul.mubr.msk.f32.gmra.mrb[10].mxu0 %vm577_vm0, %v565_v25 }
  0x33   : > { %1397 = vmatmul.mubr.msk.f32.gmra.mrb[10].mxu1 %vm577_vm0, %v565_v25 }
  0xf1   : > { %v1369_v27 = vpop.f32.mrb[0].mxu0 }
  0xf2   : > { %v1375_v28 = vpop.f32.mrb[0].mxu1  ;;  %v674_v29 = vadd.f32 %v1369_v27, %v1290_v26  ;;  %v668_v31 = vpop.f32.mrb[1].mxu0 }
  0xf3   : > { %v694_v30 = vadd.f32 %v1375_v28, %v1290_v26  ;;  %v688_v32 = vpop.f32.mrb[1].mxu1  ;;  %v669_v33 = vadd.f32 %v1290_v26, %v668_v31 }
  0xf4   : > { %v689_v34 = vadd.f32 %v1290_v26, %v688_v32  ;;  %709 = vst.msk [vmem:[%s528_s25 + $0x8] sm:$0xff] %vm707_vm1, %v674_v29 }
  0xf5   : > { %713 = vst.msk [vmem:[%s528_s25 + $0x28] sm:$0xff] %vm707_vm1, %v694_v30  ;;  %708 = vst.msk [vmem:[%s528_s25] sm:$0xff] %vm707_vm1, %v669_v33  ;;  %v1372_v35 = vpop.f32.mrb[2].mxu0 }
  0xf6   : > { %712 = vst.msk [vmem:[%s528_s25 + $0x20] sm:$0xff] %vm707_vm1, %v689_v34  ;;  %v1378_v36 = vpop.f32.mrb[2].mxu1  ;;  %v684_v37 = vadd.f32 %v1372_v35, %v1290_v26  ;;  %v678_v39 = vpop.f32.mrb[3].mxu0 }
  0xf7   : > { %v704_v38 = vadd.f32 %v1378_v36, %v1290_v26  ;;  %v698_v40 = vpop.f32.mrb[3].mxu1  ;;  %v679_v41 = vadd.f32 %v1290_v26, %v678_v39 }
  0xf8   : > { %v699_v42 = vadd.f32 %v1290_v26, %v698_v40  ;;  %711 = vst.msk [vmem:[%s528_s25 + $0x18] sm:$0xff] %vm707_vm1, %v684_v37 }
  0xf9   : > { %715 = vst.msk [vmem:[%s528_s25 + $0x38] sm:$0xff] %vm707_vm1, %v704_v38  ;;  %710 = vst.msk [vmem:[%s528_s25 + $0x10] sm:$0xff] %vm707_vm1, %v679_v41  ;;  %v1409_v46 = vpop.f32.mrb[4].mxu0 }
  0xfa   : > { %714 = vst.msk [vmem:[%s528_s25 + $0x30] sm:$0xff] %vm707_vm1, %v699_v42  ;;  %v1389_v45 = vpop.f32.mrb[4].mxu1  ;;  %v923_v48 = vadd.f32 %v1409_v46, %v1308_v44  ;;  %v917_v50 = vpop.f32.mrb[5].mxu0 }
  0xfb   : > { %v799_v47 = vadd.f32 %v1389_v45, %v1299_v43  ;;  %v793_v49 = vpop.f32.mrb[5].mxu1  ;;  %v918_v52 = vadd.f32 %v1308_v44, %v917_v50 }
  0xfc   : > { %v794_v51 = vadd.f32 %v1299_v43, %v793_v49  ;;  %957 = vst.msk [vmem:[%s1697_s21 + $0x8] sm:$0xff] %vm707_vm1, %v923_v48 }
  0xfd   : > { %833 = vst.msk [vmem:[%s1691_s18 + $0x8] sm:$0xff] %vm707_vm1, %v799_v47  ;;  %956 = vst.msk [vmem:[%s1697_s21] sm:$0xff] %vm707_vm1, %v918_v52  ;;  %v1412_v54 = vpop.f32.mrb[6].mxu0 }
  0xfe   : > { %832 = vst.msk [vmem:[%s1691_s18] sm:$0xff] %vm707_vm1, %v794_v51  ;;  %v1392_v53 = vpop.f32.mrb[6].mxu1  ;;  %v933_v56 = vadd.f32 %v1412_v54, %v1308_v44  ;;  %v927_v58 = vpop.f32.mrb[7].mxu0 }
  0xff   : > { %v809_v55 = vadd.f32 %v1392_v53, %v1299_v43  ;;  %v803_v57 = vpop.f32.mrb[7].mxu1  ;;  %v928_v60 = vadd.f32 %v1308_v44, %v927_v58 }
 0x100   : > { %v804_v59 = vadd.f32 %v1299_v43, %v803_v57  ;;  %959 = vst.msk [vmem:[%s1697_s21 + $0x18] sm:$0xff] %vm707_vm1, %v933_v56 }
 0x101   : > { %835 = vst.msk [vmem:[%s1691_s18 + $0x18] sm:$0xff] %vm707_vm1, %v809_v55  ;;  %958 = vst.msk [vmem:[%s1697_s21 + $0x10] sm:$0xff] %vm707_vm1, %v928_v60  ;;  %v1415_v62 = vpop.f32.mrb[8].mxu0 }
 0x102   : > { %834 = vst.msk [vmem:[%s1691_s18 + $0x10] sm:$0xff] %vm707_vm1, %v804_v59  ;;  %v1395_v61 = vpop.f32.mrb[8].mxu1  ;;  %v943_v0 = vadd.f32 %v1415_v62, %v1308_v44  ;;  %v937_v2 = vpop.f32.mrb[9].mxu0 }
 0x103   : > { %v819_v63 = vadd.f32 %v1395_v61, %v1299_v43  ;;  %v813_v1 = vpop.f32.mrb[9].mxu1  ;;  %v938_v4 = vadd.f32 %v1308_v44, %v937_v2 }
 0x104   : > { %v814_v3 = vadd.f32 %v1299_v43, %v813_v1  ;;  %961 = vst.msk [vmem:[%s1697_s21 + $0x28] sm:$0xff] %vm707_vm1, %v943_v0 }
 0x105   : > { %837 = vst.msk [vmem:[%s1691_s18 + $0x28] sm:$0xff] %vm707_vm1, %v819_v63  ;;  %960 = vst.msk [vmem:[%s1697_s21 + $0x20] sm:$0xff] %vm707_vm1, %v938_v4  ;;  %v1418_v6 = vpop.f32.mrb[10].mxu0 }
 0x106   : > { %836 = vst.msk [vmem:[%s1691_s18 + $0x20] sm:$0xff] %vm707_vm1, %v814_v3  ;;  %v1398_v5 = vpop.f32.mrb[10].mxu1  ;;  %v953_v8 = vadd.f32 %v1418_v6, %v1308_v44  ;;  %v947_v10 = vpop.f32.mrb[11].mxu0 }
 0x107   : > { %v829_v7 = vadd.f32 %v1398_v5, %v1299_v43  ;;  %v823_v9 = vpop.f32.mrb[11].mxu1  ;;  %v948_v12 = vadd.f32 %v1308_v44, %v947_v10 }
 0x108   : > { %v824_v11 = vadd.f32 %v1299_v43, %v823_v9  ;;  %963 = vst.msk [vmem:[%s1697_s21 + $0x38] sm:$0xff] %vm707_vm1, %v953_v8 }
 0x109   : > { %839 = vst.msk [vmem:[%s1691_s18 + $0x38] sm:$0xff] %vm707_vm1, %v829_v7  ;;  %962 = vst.msk [vmem:[%s1697_s21 + $0x30] sm:$0xff] %vm707_vm1, %v948_v12 }
 0x10a   : > { %838 = vst.msk [vmem:[%s1691_s18 + $0x30] sm:$0xff] %vm707_vm1, %v824_v11 }
 0x10b PF: > { %s20_s13 = sadd.s32 1, %s1525_s13   ;;  %s1756_s30 = smov %s1517_s11 }
 0x10c   : > { %p17_p7 = scmp.ge.s32.totalorder %s20_s13, 10   ;;  %s1757_s10 = smov %s1521_s12 }
 0x10d   : > { %s1758_s11 = smov %s1761_s14  ;;  %s1759_s12 = smov %s1765_s15 }
 0x10e   :  { %19 = sbr.rel (!%p17_p7) target bundleno = 3 (0x3), region = 120 }

</bundles_post_ra>
